<compile_context>
chip_gen: v6e
topology: v6e:2x2x1
jax: 0.10.0
libtpu: 0.0.40
codegen_flags: <defaults>
</compile_context>

<pallas_src>
import math

import jax
import jax.numpy as jnp
from jax.experimental import pallas as pl
from jax.experimental.pallas import tpu as pltpu


# ------------------------------ Pallas kernel ------------------------------- #

def _attn_map_kernel(x_ref, w1_ref, b1_ref, w2_ref, b2_ref, o_ref):
    # x_ref : [1, C, TN]  input spatial tile (channels on sublanes, HW on lanes)
    # w1/w2 : [C, C]      weights in compute dtype (resident across the grid)
    # b1/b2 : [C, 1]      f32 biases (broadcast over lanes)
    # o_ref : [1, C, TN]
    x = x_ref[0]
    h = jnp.dot(w1_ref[...], x.astype(w1_ref.dtype),
                preferred_element_type=jnp.float32)
    h = h + b1_ref[...]
    # SiLU = h * sigmoid(h); exp on the EUP, divide as approx reciprocal (EUP
    # slot) instead of the VPU reciprocal+Newton sequence.
    h = h * pl.reciprocal(1.0 + jnp.exp(-h), approx=True)
    y = jnp.dot(w2_ref[...], h.astype(w2_ref.dtype),
                preferred_element_type=jnp.float32)
    y = y + b2_ref[...]
    o_ref[0] = y.astype(o_ref.dtype)


# ------------------------------ Tiling policy ------------------------------- #

def _round_up(x, m):
    return ((x + m - 1) // m) * m


def _round_down(x, m):
    return (x // m) * m


def _vmem_capacity_bytes():
    # Per-generation VMEM: 128 MiB on v5e/v6e, 64 MiB per TensorCore on v7x.
    try:
        cap = int(pltpu.get_tpu_info().vmem_capacity_bytes)
        if cap > 0:
            return cap
    except Exception:
        pass
    return 64 * 1024 * 1024  # conservative fallback (v7x per-TC)


def _choose_tiling(B, C, HW, x_itemsize, out_itemsize, w_itemsize, vmem_capacity):
    """Largest lane-dense spatial tile TN that fits a per-generation VMEM budget."""
    vmem_budget = (vmem_capacity * 3) // 4          # ~48 MiB v7x, ~96 MiB v5e/v6e
    # Resident operands (allow for double buffering of weights as worst case).
    resident_bytes = 2 * (2 * C * C * w_itemsize) + 2 * (2 * C * 4)
    # Per-lane VMEM cost of a TN-wide tile:
    #   x input  : 2x double-buffered * C * itemsize
    #   output   : 2x double-buffered * C * itemsize
    #   in-body temporaries (x cast, h f32, h cast, y f32) ~ 12 B per channel
    per_lane_bytes = C * (2 * x_itemsize + 2 * out_itemsize + 12)
    tile_budget = max(vmem_budget - resident_bytes - (2 << 20),
                      128 * per_lane_bytes)
    tn_cap = max(128, _round_down(tile_budget // per_lane_bytes, 128))
    if tn_cap >= 256:                                # full-width MXU N passes
        tn_cap = _round_down(tn_cap, 256)

    hw_pad128 = _round_up(HW, 128)
    if hw_pad128 <= tn_cap:
        tn, n_tiles = hw_pad128, 1
    else:
        n_tiles = pl.cdiv(hw_pad128, tn_cap)
        mult = 256 if tn_cap >= 256 else 128
        tn = _round_up(pl.cdiv(hw_pad128, n_tiles), mult)   # minimize padding
    hw_padded = tn * n_tiles

    # Keep the grid >= 2 programs so both v7x TensorCores get work.
    if B * n_tiles < 2 and tn >= 256 and tn % 256 == 0:
        tn //= 2
        n_tiles *= 2
        hw_padded = tn * n_tiles

    footprint = resident_bytes + per_lane_bytes * tn + (2 << 20)
    vmem_limit = int(min(max(footprint, 32 << 20), vmem_budget))
    return tn, n_tiles, hw_padded, vmem_limit


# ------------------------------ pallas_call build ---------------------------- #

def _build_call(B, C, hw_padded, tn, n_tiles, out_dtype, vmem_limit,
                flops, transcendentals, bytes_accessed, single_buffer_weights):
    # Constant-index-map (resident) operands: single-buffer to free VMEM for a
    # larger spatial tile (matters most on v7x's 64 MiB VMEM).
    resident_kw = {"pipeline_mode": pl.Buffered(1)} if single_buffer_weights else {}
    w_spec = pl.BlockSpec((C, C), lambda b, j: (0, 0), **resident_kw)
    b_spec = pl.BlockSpec((C, 1), lambda b, j: (0, 0), **resident_kw)
    return pl.pallas_call(
        _attn_map_kernel,
        out_shape=jax.ShapeDtypeStruct((B, C, hw_padded), out_dtype),
        grid=(B, n_tiles),
        in_specs=[
            pl.BlockSpec((1, C, tn), lambda b, j: (b, 0, j)),   # x tile
            w_spec, b_spec, w_spec, b_spec,
        ],
        out_specs=pl.BlockSpec((1, C, tn), lambda b, j: (b, 0, j)),
        compiler_params=pltpu.CompilerParams(
            dimension_semantics=("parallel", "parallel"),
            vmem_limit_bytes=vmem_limit,
        ),
        cost_estimate=pl.CostEstimate(
            flops=flops,
            transcendentals=transcendentals,
            bytes_accessed=bytes_accessed,
        ),
    )


# ------------------------------ Module forward ------------------------------ #

def attn_map_forward(x, params, *, out_dtype=None, compute_dtype=jnp.bfloat16):
    """x: [B, C, H, W] (NCHW like PyTorch) -> [B, C, H, W].

    compute_dtype controls the matmul-operand cast policy (bf16 by default,
    f32 accumulation; set to jnp.float32 for strict PyTorch f32 semantics).
    out_dtype defaults to x.dtype; pass bf16 input/output at the kernel
    boundary when the surrounding graph allows it to halve HBM traffic.
    """
    B, C, H, W = x.shape
    HW = H * W
    out_dtype = jnp.dtype(x.dtype if out_dtype is None else out_dtype)
    compute_dtype = jnp.dtype(compute_dtype)

    tn, n_tiles, hw_padded, vmem_limit = _choose_tiling(
        B, C, HW, x.dtype.itemsize, out_dtype.itemsize,
        compute_dtype.itemsize, _vmem_capacity_bytes())

    x2 = x.reshape(B, C, HW)                           # free reshape, no transpose
    if hw_padded != HW:
        # Lane-pad H*W so every tile is a full multiple of 128 (no vst.msk).
        x2 = jnp.pad(x2, ((0, 0), (0, 0), (0, hw_padded - HW)))

    w1 = params["w1"].astype(compute_dtype)            # [C, C] (out, in)
    w2 = params["w2"].astype(compute_dtype)
    b1 = params["b1"].reshape(C, 1).astype(jnp.float32)
    b2 = params["b2"].reshape(C, 1).astype(jnp.float32)

    flops = 2 * 2 * B * hw_padded * C * C               # two matmuls
    transcendentals = B * hw_padded * C                  # one exp per element
    bytes_accessed = (B * C * hw_padded * (x.dtype.itemsize + out_dtype.itemsize)
                      + (w1.size + w2.size) * compute_dtype.itemsize
                      + (b1.size + b2.size) * 4)

    common = (B, C, hw_padded, tn, n_tiles, out_dtype, vmem_limit,
              flops, transcendentals, bytes_accessed)
    try:
        out = _build_call(*common, single_buffer_weights=True)(x2, w1, b1, w2, b2)
    except Exception:
        # Fallback for runtimes without Buffered(1) support on resident inputs.
        out = _build_call(*common, single_buffer_weights=False)(x2, w1, b1, w2, b2)

    if hw_padded != HW:
        out = out[:, :, :HW]
    return out.reshape(B, C, H, W)


# --------------------------- Reference & param init ------------------------- #

def attn_map_reference(x, params, compute_dtype=jnp.bfloat16):
    # Mirrors the kernel's matmul-operand cast / f32-accumulate policy.
    # NOTE: with compute_dtype=bf16 this deviates from PyTorch's pure-f32
    # Conv2d; pass compute_dtype=jnp.float32 for strict f32 semantics.
    B, C, H, W = x.shape
    x2 = x.reshape(B, C, H * W).astype(compute_dtype)
    w1 = params["w1"].astype(compute_dtype)
    w2 = params["w2"].astype(compute_dtype)
    h = jnp.einsum("oc,bcn->bon", w1, x2, preferred_element_type=jnp.float32)
    h = h + params["b1"][None, :, None]
    h = h * jax.nn.sigmoid(h)
    y = jnp.einsum("oc,bcn->bon", w2, h.astype(compute_dtype),
                   preferred_element_type=jnp.float32)
    y = y + params["b2"][None, :, None]
    return y.reshape(B, C, H, W)


def init_params(key, dim):
    # PyTorch Conv2d default init: uniform(+/- 1/sqrt(fan_in)), fan_in = dim*1*1.
    k1, k2, k3, k4 = jax.random.split(key, 4)
    bound = 1.0 / math.sqrt(dim)
    return {
        "w1": jax.random.uniform(k1, (dim, dim), jnp.float32, -bound, bound),
        "b1": jax.random.uniform(k2, (dim,), jnp.float32, -bound, bound),
        "w2": jax.random.uniform(k3, (dim, dim), jnp.float32, -bound, bound),
        "b2": jax.random.uniform(k4, (dim,), jnp.float32, -bound, bound),
    }


# ------------------------------------ Main ----------------------------------- #

if __name__ == "__main__":
    key = jax.random.PRNGKey(0)
    kx, kp, kx2 = jax.random.split(key, 3)

    # Main check: f32 in/out, H*W a multiple of 128.
    B, dim, H, W = 2, 32, 16, 16
    x = jax.random.normal(kx, (B, dim, H, W), jnp.float32)
    params = init_params(kp, dim)

    fwd = jax.jit(attn_map_forward)
    y = fwd(x, params)
    jax.block_until_ready(y)
    assert y.shape == (B, dim, H, W)
    y_ref = attn_map_reference(x, params)
    max_err = float(jnp.max(jnp.abs(y.astype(jnp.float32) - y_ref)))
    assert max_err < 2e-2, f"max abs error vs reference: {max_err}"

    # Padding path: H*W not a multiple of 128 (padded to lane-dense tiles,
    # padding sliced off after).
    Hp, Wp = 10, 10
    xp = jax.random.normal(kx2, (B, dim, Hp, Wp), jnp.float32)
    yp = fwd(xp, params)
    jax.block_until_ready(yp)
    assert yp.shape == (B, dim, Hp, Wp)
    yp_ref = attn_map_reference(xp, params)
    max_err_p = float(jnp.max(jnp.abs(yp.astype(jnp.float32) - yp_ref)))
    assert max_err_p < 2e-2, f"padded-case max abs error: {max_err_p}"

    # bf16 I/O path (halves HBM traffic when the surrounding graph allows it).
    xb = x.astype(jnp.bfloat16)
    yb = fwd(xb, params)
    jax.block_until_ready(yb)
    assert yb.dtype == jnp.bfloat16 and yb.shape == (B, dim, H, W)
    yb_ref = attn_map_reference(xb, params)
    max_err_b = float(jnp.max(jnp.abs(yb.astype(jnp.float32) - yb_ref)))
    assert max_err_b < 6e-2, f"bf16-io max abs error: {max_err_b}"

    print("KERNEL_OK")
</pallas_src>

<mosaic_0001>
module attributes {stable_mosaic.version = 11 : i64} {
  func.func @_attn_map_kernel(%arg0: i32, %arg1: i32, %arg2: memref<1x32x256xf32, #tpu.memory_space<vmem>>, %arg3: memref<32x32xbf16, #tpu.memory_space<vmem>>, %arg4: memref<32x1xf32, #tpu.memory_space<vmem>>, %arg5: memref<32x32xbf16, #tpu.memory_space<vmem>>, %arg6: memref<32x1xf32, #tpu.memory_space<vmem>>, %arg7: memref<1x32x256xf32, #tpu.memory_space<vmem>>) attributes {dimension_semantics = [#tpu.dimension_semantics<parallel>, #tpu.dimension_semantics<parallel>], iteration_bounds = array<i64: 2, 1>, scalar_prefetch = 0 : i64, scratch_operands = 0 : i64, tpu.core_type = #tpu.core_type<tc>, window_params = [{transform_indices = @transform_0, window_bounds = array<i64: 1, 32, 256>}, {pipeline_mode = #tpu.pipeline_mode<synchronous>, transform_indices = @transform_1, window_bounds = array<i64: 32, 32>}, {pipeline_mode = #tpu.pipeline_mode<synchronous>, transform_indices = @transform_2, window_bounds = array<i64: 32, 1>}, {pipeline_mode = #tpu.pipeline_mode<synchronous>, transform_indices = @transform_3, window_bounds = array<i64: 32, 32>}, {pipeline_mode = #tpu.pipeline_mode<synchronous>, transform_indices = @transform_4, window_bounds = array<i64: 32, 1>}, {transform_indices = @transform_5, window_bounds = array<i64: 1, 32, 256>}]} {
    %c0 = arith.constant 0 : index
    %c0_0 = arith.constant 0 : index
    %c0_1 = arith.constant 0 : index
    %0 = vector.load %arg2[%c0, %c0_0, %c0_1] : memref<1x32x256xf32, #tpu.memory_space<vmem>>, vector<1x32x256xf32>
    %1 = vector.shape_cast %0 : vector<1x32x256xf32> to vector<32x256xf32>
    %c0_2 = arith.constant 0 : index
    %c0_3 = arith.constant 0 : index
    %2 = vector.load %arg3[%c0_2, %c0_3] : memref<32x32xbf16, #tpu.memory_space<vmem>>, vector<32x32xbf16>
    %3 = arith.truncf %1 : vector<32x256xf32> to vector<32x256xbf16>
    %cst = arith.constant dense<0.000000e+00> : vector<32x256xf32>
    %4 = tpu.matmul %2, %3, %cst {dimension_numbers = #tpu.dot_dimension_numbers<[1], [0], [0], [1], [0, 0, 1, 1], [], []>} : vector<32x32xbf16>, vector<32x256xbf16>, vector<32x256xf32> -> vector<32x256xf32>
    %c0_4 = arith.constant 0 : index
    %c0_5 = arith.constant 0 : index
    %5 = vector.load %arg4[%c0_4, %c0_5] : memref<32x1xf32, #tpu.memory_space<vmem>>, vector<32x1xf32>
    %6 = vector.broadcast %5 : vector<32x1xf32> to vector<32x256xf32>
    %7 = arith.addf %4, %6 : vector<32x256xf32>
    %cst_6 = arith.constant 0.000000e+00 : f32
    %8 = vector.broadcast %cst_6 : f32 to vector<32x256xf32>
    %9 = arith.subf %8, %7 : vector<32x256xf32>
    %10 = math.exp %9 : vector<32x256xf32>
    %cst_7 = arith.constant 1.000000e+00 : f32
    %11 = vector.broadcast %cst_7 : f32 to vector<32x256xf32>
    %12 = arith.addf %11, %10 : vector<32x256xf32>
    %13 = tpu.reciprocal %12 {approx = true} : vector<32x256xf32> -> vector<32x256xf32>
    %14 = arith.mulf %7, %13 : vector<32x256xf32>
    %c0_8 = arith.constant 0 : index
    %c0_9 = arith.constant 0 : index
    %15 = vector.load %arg5[%c0_8, %c0_9] : memref<32x32xbf16, #tpu.memory_space<vmem>>, vector<32x32xbf16>
    %16 = arith.truncf %14 : vector<32x256xf32> to vector<32x256xbf16>
    %cst_10 = arith.constant dense<0.000000e+00> : vector<32x256xf32>
    %17 = tpu.matmul %15, %16, %cst_10 {dimension_numbers = #tpu.dot_dimension_numbers<[1], [0], [0], [1], [0, 0, 1, 1], [], []>} : vector<32x32xbf16>, vector<32x256xbf16>, vector<32x256xf32> -> vector<32x256xf32>
    %c0_11 = arith.constant 0 : index
    %c0_12 = arith.constant 0 : index
    %18 = vector.load %arg6[%c0_11, %c0_12] : memref<32x1xf32, #tpu.memory_space<vmem>>, vector<32x1xf32>
    %19 = vector.broadcast %18 : vector<32x1xf32> to vector<32x256xf32>
    %20 = arith.addf %17, %19 : vector<32x256xf32>
    %c0_13 = arith.constant 0 : index
    %c0_14 = arith.constant 0 : index
    %c0_15 = arith.constant 0 : index
    %21 = vector.load %arg7[%c0_13, %c0_14, %c0_15] : memref<1x32x256xf32, #tpu.memory_space<vmem>>, vector<1x32x256xf32>
    %22 = vector.shape_cast %21 : vector<1x32x256xf32> to vector<32x256xf32>
    %23 = vector.shape_cast %20 : vector<32x256xf32> to vector<1x32x256xf32>
    tpu.vector_store %arg7[%c0_13, %c0_14, %c0_15], %23 {strides = array<i32>} : memref<1x32x256xf32, #tpu.memory_space<vmem>>, vector<1x32x256xf32>,
    return
  }
  func.func @transform_0(%arg0: i32, %arg1: i32) -> (i32, i32, i32) {
    %c0_i32 = arith.constant 0 : i32
    %c0_i32_0 = arith.constant 0 : i32
    return %arg0, %c0_i32, %arg1 : i32, i32, i32
  }
  func.func @transform_1(%arg0: i32, %arg1: i32) -> (i32, i32) {
    %c0_i32 = arith.constant 0 : i32
    %c0_i32_0 = arith.constant 0 : i32
    %c0_i32_1 = arith.constant 0 : i32
    return %c0_i32, %c0_i32_0 : i32, i32
  }
  func.func @transform_2(%arg0: i32, %arg1: i32) -> (i32, i32) {
    %c0_i32 = arith.constant 0 : i32
    %c0_i32_0 = arith.constant 0 : i32
    %c0_i32_1 = arith.constant 0 : i32
    return %c0_i32, %c0_i32_0 : i32, i32
  }
  func.func @transform_3(%arg0: i32, %arg1: i32) -> (i32, i32) {
    %c0_i32 = arith.constant 0 : i32
    %c0_i32_0 = arith.constant 0 : i32
    %c0_i32_1 = arith.constant 0 : i32
    return %c0_i32, %c0_i32_0 : i32, i32
  }
  func.func @transform_4(%arg0: i32, %arg1: i32) -> (i32, i32) {
    %c0_i32 = arith.constant 0 : i32
    %c0_i32_0 = arith.constant 0 : i32
    %c0_i32_1 = arith.constant 0 : i32
    return %c0_i32, %c0_i32_0 : i32, i32
  }
  func.func @transform_5(%arg0: i32, %arg1: i32) -> (i32, i32, i32) {
    %c0_i32 = arith.constant 0 : i32
    %c0_i32_0 = arith.constant 0 : i32
    return %arg0, %c0_i32, %arg1 : i32, i32, i32
  }
}

</mosaic_0001>

<bundles_post_ra>
// kernel: attn_map_forward.1
= control target key start
LH: loop header
LB: loop body
LE: loop exit
PB: predicated region body
PF: predicated region fallthrough
CT: control target
= control target key end

     0   :  { %s758_s18 = smov 0   ;;  %s760_s19 = smov 0   ;;  %s864_s0 = inlined_call_operand.vmem [shape: f32[2,32,256], index: 0, kind: input, shape index: {}]   ;;  %s865_s1 = inlined_call_operand.vmem [shape: bf16[32,32], index: 1, kind: input, shape index: {}]   ;;  %s866_s2 = inlined_call_operand.vmem [shape: f32[32,1], index: 2, kind: input, shape index: {}]   ;;  %s867_s3 = inlined_call_operand.vmem [shape: bf16[32,32], index: 3, kind: input, shape index: {}]   ;;  %s868_s4 = inlined_call_operand.vmem [shape: f32[32,1], index: 4, kind: input, shape index: {}]   ;;  %s869_s5 = inlined_call_operand.vmem [shape: f32[2,32,256], index: 5, kind: output, shape index: {}]  }
   0x1   :  { %s762_s20 = smov 0  }
   0x2 LB: > { %s27_s21 = sadd.s32 1, %s721_s19  ;;  %p623_p0 = scmp.ge.s32.totalorder %s725_s20, 1  ;;  %s725_s20 = sphi %s762_s20, %s15_s20   ;;  %s721_s19 = sphi %s760_s19, %s871_s19   ;;  %s717_s18 = sphi %s758_s18, %s870_s18  }
   0x3   : > { %p29_p1 = scmp.ge.s32.totalorder %s27_s21, 2  ;;  %p208_p2 = scmp.lt.s32.totalorder %s725_s20, 3 }
   0x5   : > { %s873_s21 = smov (%p29_p1, %s27_s21), 0  ;;  %p209_p3 = pnand %p623_p0, %p208_p2 }
   0x6   : > { %p245_p4 = scmp.lt.s32.totalorder (!%p209_p3), %s717_s18, 1 }
   0x7   : > { %212 = sbr.rel (%p209_p3) target bundleno = 493 (0x1ed), region = 40 }
   0xc   : > { %v727_v0 = vmov 0   ;;  %s875_s18 = smov (!%p245_p4, %s717_s18), 1  ;;  %v283_v1 = vld [vmem:[%s866_s2 + $0x10] sm:$0xff]  ;;  %v281_v2 = vld [vmem:[%s866_s2] sm:$0xff]  ;;  %v284_v3 = vld [vmem:[%s866_s2 + $0x18] sm:$0xff]  ;;  %vm315_vm0 = vcmask 261120  }
   0xd   : > { %354 = vmatprep.mubr.bf16.mxu0 %v727_v0  ;;  %665 = vset.pattern.permute.xlu0 %v727_v0  ;;  %s638_s26 = sshll.u32 %s875_s18, 6  ;;  %v282_v4 = vld [vmem:[%s866_s2 + $0x8] sm:$0xff]  ;;  %v431_v8 = vld [vmem:[%s868_s4] sm:$0xff]  ;;  %v433_v19 = vld [vmem:[%s868_s4 + $0x10] sm:$0xff] }
   0xe   : > { %666 = vset.pattern.permute.xlu1 %v727_v0  ;;  %503 = vmatprep.mubr.bf16.mxu1 %v727_v0  ;;  %s252_s8 = scalar_lea.vmem %s864_s0, %s638_s26  ;;  %v432_v17 = vld [vmem:[%s868_s4 + $0x8] sm:$0xff]  ;;  %v667_v20 = vld [vmem:[%s865_s1] sm:$0xff]   ;;  %v434_v21 = vld [vmem:[%s868_s4 + $0x18] sm:$0xff]  ;;  %s262_s7 = scalar_lea.vmem %s869_s5, %s638_s26 }
   0xf   : > { %297 = vperm.xlu0 %665, %v283_v1   ;;  %287 = vperm.xlu1 %666, %v281_v2   ;;  %v270_v5 = vld [vmem:[%s252_s8 + $0x28] sm:$0xff]  ;;  %v272_v6 = vld [vmem:[%s252_s8 + $0x38] sm:$0xff]  ;;  %v269_v7 = vld [vmem:[%s252_s8 + $0x20] sm:$0xff] }
  0x10   : > { %v280_v9 = vpack.c.bf16 %v272_v6, %v270_v5  ;;  %v271_v10 = vld [vmem:[%s252_s8 + $0x30] sm:$0xff]  ;;  %v266_v11 = vld [vmem:[%s252_s8 + $0x8] sm:$0xff]  ;;  %v268_v12 = vld [vmem:[%s252_s8 + $0x18] sm:$0xff] }
  0x11   : > { %v279_v13 = vpack.c.bf16 %v271_v10, %v269_v7  ;;  %v278_v14 = vpack.c.bf16 %v268_v12, %v266_v11  ;;  %v265_v15 = vld [vmem:[%s252_s8] sm:$0xff]  ;;  %v267_v16 = vld [vmem:[%s252_s8 + $0x10] sm:$0xff]  ;;  %v668_v22 = vld [vmem:[%s865_s1 + $0x8] sm:$0xff]  }
  0x12   : > { %334 = vmatprep.subr.bf16.mxu0 %v280_v9  ;;  %v277_v18 = vpack.c.bf16 %v267_v16, %v265_v15 }
  0x13   : > { %302 = vperm.xlu0 %665, %v284_v3   ;;  %292 = vperm.xlu1 %666, %v282_v4  }
  0x14   : > { %335 = vmatpush1.bf16.msra.mxu0 %v279_v13 }
  0x15   : > { %336 = vmatprep.subr.bf16.mxu0 %v278_v14 }
  0x17   : > { %437 = vperm.xlu0 %665, %v431_v8   ;;  %442 = vperm.xlu1 %666, %v432_v17  }
  0x18   : > { %337 = vmatpush1.bf16.msra.mxu0 %v277_v18 }
  0x1b   : > { %447 = vperm.xlu0 %665, %v433_v19   ;;  %452 = vperm.xlu1 %666, %v434_v21  }
  0x1c   : > { %630 = vmatmul.mubr.msk.bf16.vlgmr.msra.gmra.mxu0 %vm315_vm0, %v667_v20 }
  0x1d   : > { %364 = vmatprep.mubr.bf16.mxu0 %v727_v0 }
  0x24   : > { %631 = vmatmul.mubr.msk.bf16.gmra.mxu0 %vm315_vm0, %v668_v22 }
  0x8a   : > { %v288_v23 = vpop.permute.xlu1 %287  ;;  %v298_v30 = vpop.permute.xlu0 %297 }
  0x8e   : > { %v293_v27 = vpop.permute.xlu1 %292  ;;  %v303_v45 = vpop.permute.xlu0 %302 }
  0xdc   : > { %v356_v24 = vpop.f32.mrf.mxu0 }
  0xdd   : > { %v828_v34 = vadd.f32 %v356_v24, %v288_v23 }
  0xde   : > { %v358_v25 = vpop.f32.mrf.mxu0 }
  0xdf   : > { %v821_v26 = vadd.f32 %v358_v25, %v288_v23  ;;  %v375_v44 = vsub.f32 0.0, %v828_v34 }
  0xe0   : > { %v360_v28 = vpop.f32.mrf.mxu0 }
  0xe1   : > { %v376_v29 = vsub.f32 0.0, %v821_v26  ;;  %v824_v31 = vadd.f32 %v360_v28, %v293_v27  ;;  %v383_v55 = vmul.f32 1.442695, %v375_v44 }
  0xe2   : > { %v362_v32 = vpop.f32.mrf.mxu0 }
  0xe3   : > { %v826_v33 = vadd.f32 %v362_v32, %v293_v27  ;;  %v385_v35 = vmul.f32 1.442695, %v376_v29  ;;  %v377_v39 = vsub.f32 0.0, %v824_v31 }
  0xe4   : > { %v366_v36 = vpop.f32.mrf.mxu0 }
  0xe5   : > { %v378_v37 = vsub.f32 0.0, %v826_v33  ;;  %v831_v38 = vadd.f32 %v366_v36, %v298_v30  ;;  %671 = vpow2.f32 %v385_v35  ;;  %v387_v50 = vmul.f32 1.442695, %v377_v39  ;;  %v443_v39 = vpop.permute.xlu1 %442 }
  0xe6   : > { %v368_v40 = vpop.f32.mrf.mxu0 }
  0xe7   : > { %v389_v41 = vmul.f32 1.442695, %v378_v37  ;;  %v379_v42 = vsub.f32 0.0, %v831_v38  ;;  %v369_v43 = vadd.f32 %v368_v40, %v298_v30 }
  0xe8   : > { %v370_v46 = vpop.f32.mrf.mxu0 }
  0xe9   : > { %673 = vpow2.f32 %v389_v41  ;;  %v391_v47 = vmul.f32 1.442695, %v379_v42  ;;  %v380_v48 = vsub.f32 0.0, %v369_v43  ;;  %v371_v49 = vadd.f32 %v370_v46, %v303_v45 }
  0xea   : > { %v372_v51 = vpop.f32.mrf.mxu0 }
  0xeb   : > { %v393_v52 = vmul.f32 1.442695, %v380_v48  ;;  %v381_v53 = vsub.f32 0.0, %v371_v49  ;;  %v373_v54 = vadd.f32 %v372_v51, %v303_v45  ;;  %675 = vpow2.f32 %v391_v47  ;;  %v453_v48 = vpop.permute.xlu1 %452 }
  0xed   : > { %677 = vpow2.f32 %v393_v52  ;;  %v395_v56 = vmul.f32 1.442695, %v381_v53  ;;  %v382_v57 = vsub.f32 0.0, %v373_v54 }
  0xee   : > { %679 = vpow2.f32 %v387_v50 }
  0xef   : > { %681 = vpow2.f32 %v395_v56  ;;  %v397_v58 = vmul.f32 1.442695, %v382_v57 }
  0xf0   : > { %683 = vpow2.f32 %v383_v55 }
  0xf1   : > { %685 = vpow2.f32 %v397_v58 }
  0xf2   : > { %v672_v59 = vpop.eup %671 }
  0xf3   : > { %v400_v61 = vadd.f32 1.0, %v672_v59 }
  0xf5   : > { %687 = vrcp.f32 %v400_v61 }
  0xf6   : > { %v674_v60 = vpop.eup %673 }
  0xf7   : > { %v402_v63 = vadd.f32 1.0, %v674_v60 }
  0xf8   : > { %v676_v62 = vpop.eup %675 }
  0xf9   : > { %v403_v5 = vadd.f32 1.0, %v676_v62  ;;  %689 = vrcp.f32 %v402_v63 }
  0xfa   : > { %v678_v1 = vpop.eup %677 }
  0xfb   : > { %v680_v2 = vpop.eup %679  ;;  %v404_v3 = vadd.f32 1.0, %v678_v1 }
  0xfc   : > { %v682_v4 = vpop.eup %681  ;;  %v401_v9 = vadd.f32 1.0, %v680_v2 }
  0xfd   : > { %v684_v6 = vpop.eup %683  ;;  %v405_v7 = vadd.f32 1.0, %v682_v4  ;;  %691 = vrcp.f32 %v404_v3 }
  0xfe   : > { %v686_v8 = vpop.eup %685  ;;  %v399_v11 = vadd.f32 1.0, %v684_v6 }
  0xff   : > { %693 = vrcp.f32 %v405_v7  ;;  %v406_v10 = vadd.f32 1.0, %v686_v8 }
 0x100   : > { %695 = vrcp.f32 %v403_v5 }
 0x101   : > { %697 = vrcp.f32 %v406_v10 }
 0x102   : > { %699 = vrcp.f32 %v401_v9  ;;  %v688_v12 = vpop.eup %687 }
 0x103   : > { %701 = vrcp.f32 %v399_v11  ;;  %v416_v25 = vmul.f32 %v688_v12, %v821_v26  ;;  %v670_v26 = vld [vmem:[%s867_s3 + $0x8] sm:$0xff]  }
 0x106   : > { %v690_v13 = vpop.eup %689 }
 0x107   : > { %v418_v20 = vmul.f32 %v690_v13, %v826_v33  ;;  %v669_v33 = vld [vmem:[%s867_s3] sm:$0xff]  }
 0x109   : > { %v428_v30 = vpack.c.bf16 %v418_v20, %v416_v25 }
 0x10a   : > { %v692_v14 = vpop.eup %691 }
 0x10b   : > { %v420_v21 = vmul.f32 %v692_v14, %v369_v43 }
 0x10c   : > { %v694_v15 = vpop.eup %693 }
 0x10d   : > { %v696_v16 = vpop.eup %695  ;;  %v421_v18 = vmul.f32 %v694_v15, %v371_v49 }
 0x10e   : > { %v698_v17 = vpop.eup %697  ;;  %v419_v23 = vmul.f32 %v696_v16, %v831_v38 }
 0x10f   : > { %v700_v19 = vpop.eup %699  ;;  %v422_v22 = vmul.f32 %v698_v17, %v373_v54 }
 0x110   : > { %v702_v24 = vpop.eup %701  ;;  %v417_v28 = vmul.f32 %v700_v19, %v824_v31  ;;  %v429_v29 = vpack.c.bf16 %v421_v18, %v419_v23  ;;  %v438_v31 = vpop.permute.xlu0 %437 }
 0x111   : > { %v430_v27 = vpack.c.bf16 %v422_v22, %v420_v21  ;;  %v415_v32 = vmul.f32 %v702_v24, %v828_v34 }
 0x113   : > { %483 = vmatprep.subr.bf16.mxu1 %v430_v27  ;;  %v427_v35 = vpack.c.bf16 %v417_v28, %v415_v32 }
 0x114   : > { %484 = vmatpush1.bf16.msra.mxu1 %v429_v29  ;;  %v448_v43 = vpop.permute.xlu0 %447 }
 0x115   : > { %485 = vmatprep.subr.bf16.mxu1 %v428_v30 }
 0x118   : > { %486 = vmatpush1.bf16.msra.mxu1 %v427_v35 }
 0x11b   : > { %634 = vmatmul.mubr.msk.bf16.vlgmr.msra.gmra.mxu1 %vm315_vm0, %v669_v33 }
 0x11c   : > { %513 = vmatprep.mubr.bf16.mxu1 %v727_v0 }
 0x123   : > { %635 = vmatmul.mubr.msk.bf16.gmra.mxu1 %vm315_vm0, %v670_v26 }
 0x1db   : > { %v505_v34 = vpop.f32.mrf.mxu1 }
 0x1dc   : > { %v506_v36 = vadd.f32 %v505_v34, %v438_v31 }
 0x1dd   : > { %v507_v37 = vpop.f32.mrf.mxu1 }
 0x1de   : > { %524 = vst [vmem:[%s262_s7] sm:$0xff] %v506_v36  ;;  %v508_v38 = vadd.f32 %v507_v37, %v438_v31 }
 0x1df   : > { %v509_v40 = vpop.f32.mrf.mxu1 }
 0x1e0   : > { %525 = vst [vmem:[%s262_s7 + $0x8] sm:$0xff] %v508_v38  ;;  %v510_v0 = vadd.f32 %v509_v40, %v443_v39 }
 0x1e1   : > { %v511_v41 = vpop.f32.mrf.mxu1 }
 0x1e2   : > { %526 = vst [vmem:[%s262_s7 + $0x10] sm:$0xff] %v510_v0  ;;  %v512_v42 = vadd.f32 %v511_v41, %v443_v39 }
 0x1e3   : > { %v515_v44 = vpop.f32.mrf.mxu1 }
 0x1e4   : > { %527 = vst [vmem:[%s262_s7 + $0x18] sm:$0xff] %v512_v42  ;;  %v516_v45 = vadd.f32 %v515_v44, %v448_v43 }
 0x1e5   : > { %v517_v46 = vpop.f32.mrf.mxu1 }
 0x1e6   : > { %528 = vst [vmem:[%s262_s7 + $0x20] sm:$0xff] %v516_v45  ;;  %v518_v47 = vadd.f32 %v517_v46, %v448_v43 }
 0x1e7   : > { %v519_v49 = vpop.f32.mrf.mxu1 }
 0x1e8   : > { %529 = vst [vmem:[%s262_s7 + $0x28] sm:$0xff] %v518_v47  ;;  %v520_v50 = vadd.f32 %v519_v49, %v453_v48 }
 0x1e9   : > { %v521_v51 = vpop.f32.mrf.mxu1 }
 0x1ea   : > { %530 = vst [vmem:[%s262_s7 + $0x30] sm:$0xff] %v520_v50  ;;  %v522_v52 = vadd.f32 %v521_v51, %v453_v48 }
 0x1ec   : > { %531 = vst [vmem:[%s262_s7 + $0x38] sm:$0xff] %v522_v52 }
 0x1ed PF: > { %s15_s20 = sadd.s32 1, %s725_s20   ;;  %s870_s18 = smov %s721_s19 }
 0x1ee   : > { %p12_p5 = scmp.ge.s32.totalorder %s15_s20, 4   ;;  %s871_s19 = smov %s873_s21 }
 0x1f0   :  { %14 = sbr.rel (!%p12_p5) target bundleno = 2 (0x2), region = 70 }

</bundles_post_ra>
